<compile_context>
chip_gen: v5e
topology: v5e:2x2
jax: 0.10.0
libtpu: 0.0.40
codegen_flags: <defaults>
</compile_context>

<pallas_src>
import jax
import jax.numpy as jnp
import numpy as np
from jax.experimental import pallas as pl
from jax.experimental.pallas import tpu as pltpu


# ---------------------------------------------------------------------------
# Kernel: one grid step == one image, lane-dense activations (H, W*CP).
# ---------------------------------------------------------------------------
def basic_block_kernel(x_ref, bw1_ref, bw2_ref, b1_ref, b2_ref, out_ref):
    # x_ref   : (1, H, L)  f32 activations, L = W*CP (lane-dense, L % 128 == 0)
    # bw*_ref : (3*L, L)   banded conv weights, kh stacked along K, BN scale
    #                      already folded into the output columns (MXU dtype)
    # b*_ref  : (1, L)     folded BN bias tiled over (w, c), f32
    # out_ref : (1, H, L)  f32
    _, H, L = x_ref.shape
    mxu_dtype = bw1_ref.dtype

    x_f32 = x_ref[0]                                     # (H, L) exact residual

    row = jax.lax.broadcasted_iota(jnp.int32, (H, 1), 0)
    not_first = row > 0                                  # row h needs act[h-1]
    not_last = row < H - 1                               # row h needs act[h+1]

    def stack_kh(act_f32):
        # Per output row h, build [act[h-1] | act[h] | act[h+1]] along K.
        # Row shifts via pltpu.roll (XLU) + boundary masks; no boundary-crossing
        # slices, no scratch round trip.  Cast to MXU dtype once, post-stack.
        up = jnp.where(not_first, pltpu.roll(act_f32, 1, axis=0), 0.0)
        down = jnp.where(not_last, pltpu.roll(act_f32, H - 1, axis=0), 0.0)
        return jnp.concatenate([up, act_f32, down], axis=1).astype(mxu_dtype)

    # conv1 (bn1 scale folded into bw1) -> bias -> ReLU : one K=3L MXU matmul.
    h1 = jnp.dot(stack_kh(x_f32), bw1_ref[...],
                 preferred_element_type=jnp.float32)
    h1 = jnp.maximum(h1 + b1_ref[...], 0.0)

    # conv2 (bn2 scale folded) -> bias -> +identity (f32) -> ReLU.
    h2 = jnp.dot(stack_kh(h1), bw2_ref[...],
                 preferred_element_type=jnp.float32)
    out_ref[0] = jnp.maximum(h2 + b2_ref[...] + x_f32, 0.0).astype(out_ref.dtype)


# ---------------------------------------------------------------------------
# Parameter builder (run once, jit-safe; cache the result as block parameters).
# ---------------------------------------------------------------------------
def _banded_weight(w_hwio, scale, cin, cout, cp, width):
    """(3,3,cin,cout) HWIO -> (3*W*CP, W*CP) kh-stacked banded matrix with the
    folded BN scale baked into the output columns.

    bw[kh*L + win*cp + ci, wout*cp + co] = w[kh, kw, ci, co] * scale[co]
    with win = wout + kw - 1 (taps outside [0, W) dropped == zero spatial pad).
    """
    L = width * cp
    w = jnp.asarray(w_hwio, jnp.float32) \
        * jnp.asarray(scale, jnp.float32)[None, None, None, :]
    w = jnp.pad(w, ((0, 0), (0, 0), (0, cp - cin), (0, cp - cout)))  # (3,3,cp,cp)
    idx = jnp.arange(width)
    per_kh = []
    for kh in range(3):
        acc = jnp.zeros((L, L), jnp.float32)
        for kw in range(3):
            shift = (idx[:, None] == idx[None, :] + (kw - 1)).astype(jnp.float32)
            acc = acc + jnp.kron(shift, w[kh, kw])
        per_kh.append(acc)
    return jnp.concatenate(per_kh, axis=0)                           # (3L, L)


def _lane_bias(bias, cout, cp, width):
    b = jnp.pad(jnp.asarray(bias, jnp.float32), (0, cp - cout))
    return jnp.tile(b, width).reshape(1, width * cp)


def make_basic_block_params(w1_hwio, w2_hwio, scale1, bias1, scale2, bias2,
                            width, *, mxu_dtype=jnp.bfloat16):
    """Precompute kernel parameters once; reuse across forward calls."""
    cin, cout = w1_hwio.shape[2], w1_hwio.shape[3]
    assert cin == cout, "stride=1 / no-downsample BasicBlock requires Cin == Cout"
    cp = ((cout + 7) // 8) * 8
    return dict(
        bw1=_banded_weight(w1_hwio, scale1, cin, cout, cp, width).astype(mxu_dtype),
        bw2=_banded_weight(w2_hwio, scale2, cout, cout, cp, width).astype(mxu_dtype),
        b1=_lane_bias(bias1, cout, cp, width),
        b2=_lane_bias(bias2, cout, cp, width),
        cp=cp,
    )


# ---------------------------------------------------------------------------
# Forward wrapper.
# ---------------------------------------------------------------------------
def basic_block_forward(x_nchw, params):
    """Fused BasicBlock forward. x_nchw: (N, C, H, W) f32 -> (N, C, H, W) f32."""
    N, C, H, W = x_nchw.shape
    cp = params["cp"]
    L = W * cp
    assert L % 128 == 0 and H % 8 == 0, "lane-dense layout assumption (toy size)"

    # NCHW -> lane-dense (N, H, W*CP), channels zero-padded, kept in f32 so the
    # in-kernel residual add is exact.
    x_nhwc = jnp.transpose(x_nchw, (0, 2, 3, 1)).astype(jnp.float32)
    x_lane = jnp.pad(x_nhwc, ((0, 0), (0, 0), (0, 0), (0, cp - C))).reshape(N, H, L)

    out_lane = pl.pallas_call(
        basic_block_kernel,
        out_shape=jax.ShapeDtypeStruct((N, H, L), jnp.float32),
        grid_spec=pltpu.PrefetchScalarGridSpec(
            num_scalar_prefetch=0,
            grid=(N,),                                   # pipelined over batch
            in_specs=[
                pl.BlockSpec((1, H, L), lambda b: (b, 0, 0)),
                pl.BlockSpec((3 * L, L), lambda b: (0, 0)),   # constant index ->
                pl.BlockSpec((3 * L, L), lambda b: (0, 0)),   # weights DMA'd once
                pl.BlockSpec((1, L), lambda b: (0, 0)),
                pl.BlockSpec((1, L), lambda b: (0, 0)),
            ],
            out_specs=pl.BlockSpec((1, H, L), lambda b: (b, 0, 0)),
        ),
        compiler_params=pltpu.CompilerParams(
            dimension_semantics=("parallel",)),          # v7x: batch over 2 TCs
    )(x_lane, params["bw1"], params["bw2"], params["b1"], params["b2"])

    out_nhwc = out_lane.reshape(N, H, W, cp)[..., :C]
    return jnp.transpose(out_nhwc, (0, 3, 1, 2)).astype(x_nchw.dtype)


# ---------------------------------------------------------------------------
# Pure-JAX reference (PyTorch BasicBlock in eval mode).
# ---------------------------------------------------------------------------
def reference_forward(x_nchw, w1_hwio, w2_hwio, s1, b1, s2, b2):
    x = jnp.transpose(x_nchw, (0, 2, 3, 1))
    dn = ("NHWC", "HWIO", "NHWC")
    y = jax.lax.conv_general_dilated(x, w1_hwio, (1, 1), "SAME",
                                     dimension_numbers=dn)
    y = jnp.maximum(y * s1 + b1, 0.0)
    y = jax.lax.conv_general_dilated(y, w2_hwio, (1, 1), "SAME",
                                     dimension_numbers=dn)
    y = jnp.maximum(y * s2 + b2 + x, 0.0)
    return jnp.transpose(y, (0, 3, 1, 2))


if __name__ == "__main__":
    key = jax.random.PRNGKey(0)
    N, C, H, W = 2, 4, 16, 16     # inplanes = planes = 4, stride = 1, no downsample
    planes = 4
    eps = 1e-5

    k_x, k_w1, k_w2, k_bn = jax.random.split(key, 4)
    x = jax.random.normal(k_x, (N, C, H, W), jnp.float32)

    # Conv weights in PyTorch OIHW layout, transposed to HWIO.
    w1_oihw = jax.random.normal(k_w1, (planes, C, 3, 3), jnp.float32) * (2.0 / (C * 9)) ** 0.5
    w2_oihw = jax.random.normal(k_w2, (planes, planes, 3, 3), jnp.float32) * (2.0 / (planes * 9)) ** 0.5
    w1_hwio = jnp.transpose(w1_oihw, (2, 3, 1, 0))
    w2_hwio = jnp.transpose(w2_oihw, (2, 3, 1, 0))

    # Deterministic (non-trivial) BatchNorm parameters + running stats.
    kg1, kb1, kg2, kb2 = jax.random.split(k_bn, 4)
    gamma1 = 1.0 + 0.1 * jax.random.normal(kg1, (planes,), jnp.float32)
    beta1 = 0.05 * jax.random.normal(kb1, (planes,), jnp.float32)
    gamma2 = 1.0 + 0.1 * jax.random.normal(kg2, (planes,), jnp.float32)
    beta2 = 0.05 * jax.random.normal(kb2, (planes,), jnp.float32)
    mean1 = jnp.linspace(-0.1, 0.1, planes, dtype=jnp.float32)
    var1 = jnp.linspace(0.8, 1.2, planes, dtype=jnp.float32)
    mean2 = jnp.linspace(0.05, -0.05, planes, dtype=jnp.float32)
    var2 = jnp.linspace(1.1, 0.9, planes, dtype=jnp.float32)

    scale1 = gamma1 / jnp.sqrt(var1 + eps)
    bias1 = beta1 - mean1 * scale1
    scale2 = gamma2 / jnp.sqrt(var2 + eps)
    bias2 = beta2 - mean2 * scale2

    ref = reference_forward(x, w1_hwio, w2_hwio, scale1, bias1, scale2, bias2)

    # Strict correctness check with f32 MXU operands.
    params_f32 = make_basic_block_params(w1_hwio, w2_hwio, scale1, bias1,
                                         scale2, bias2, W, mxu_dtype=jnp.float32)
    out_f32 = jax.block_until_ready(basic_block_forward(x, params_f32))
    np.testing.assert_allclose(np.asarray(out_f32), np.asarray(ref),
                               rtol=1e-3, atol=1e-3)

    # Default bf16 MXU path (v6e/v7x throughput); f32 accumulation + f32 VPU
    # epilogue + f32 residual.
    params_bf16 = make_basic_block_params(w1_hwio, w2_hwio, scale1, bias1,
                                          scale2, bias2, W)
    out_bf16 = jax.block_until_ready(basic_block_forward(x, params_bf16))
    np.testing.assert_allclose(np.asarray(out_bf16), np.asarray(ref),
                               rtol=5e-2, atol=5e-2)

    print("KERNEL_OK")
</pallas_src>

<mosaic_0001>
module attributes {stable_mosaic.version = 11 : i64} {
  func.func @basic_block_kernel(%arg0: i32, %arg1: memref<1x16x128xf32, #tpu.memory_space<vmem>>, %arg2: memref<384x128xf32, #tpu.memory_space<vmem>>, %arg3: memref<384x128xf32, #tpu.memory_space<vmem>>, %arg4: memref<1x128xf32, #tpu.memory_space<vmem>>, %arg5: memref<1x128xf32, #tpu.memory_space<vmem>>, %arg6: memref<1x16x128xf32, #tpu.memory_space<vmem>>) attributes {dimension_semantics = [#tpu.dimension_semantics<parallel>], iteration_bounds = array<i64: 2>, scalar_prefetch = 0 : i64, scratch_operands = 0 : i64, tpu.core_type = #tpu.core_type<tc>, window_params = [{transform_indices = @transform_0, window_bounds = array<i64: 1, 16, 128>}, {pipeline_mode = #tpu.pipeline_mode<synchronous>, transform_indices = @transform_1, window_bounds = array<i64: 384, 128>}, {pipeline_mode = #tpu.pipeline_mode<synchronous>, transform_indices = @transform_2, window_bounds = array<i64: 384, 128>}, {pipeline_mode = #tpu.pipeline_mode<synchronous>, transform_indices = @transform_3, window_bounds = array<i64: 1, 128>}, {pipeline_mode = #tpu.pipeline_mode<synchronous>, transform_indices = @transform_4, window_bounds = array<i64: 1, 128>}, {transform_indices = @transform_5, window_bounds = array<i64: 1, 16, 128>}]} {
    %c0 = arith.constant 0 : index
    %c0_0 = arith.constant 0 : index
    %c0_1 = arith.constant 0 : index
    %0 = vector.load %arg1[%c0, %c0_0, %c0_1] : memref<1x16x128xf32, #tpu.memory_space<vmem>>, vector<1x16x128xf32>
    %1 = vector.shape_cast %0 : vector<1x16x128xf32> to vector<16x128xf32>
    %2 = tpu.iota {dimensions = array<i32: 0>} : vector<16x1xi32>
    %c0_i32 = arith.constant 0 : i32
    %3 = vector.broadcast %c0_i32 : i32 to vector<16x1xi32>
    %4 = arith.cmpi sgt, %2, %3 : vector<16x1xi32>
    %c15_i32 = arith.constant 15 : i32
    %5 = vector.broadcast %c15_i32 : i32 to vector<16x1xi32>
    %6 = arith.cmpi slt, %2, %5 : vector<16x1xi32>
    %c1_i32 = arith.constant 1 : i32
    %7 = tpu.dynamic_rotate %1 by %c1_i32 dim 0 : vector<16x128xf32>, i32 -> vector<16x128xf32>
    %cst = arith.constant 0.000000e+00 : f32
    %8 = vector.shape_cast %4 : vector<16x1xi1> to vector<16x1xi1>
    %9 = vector.broadcast %8 : vector<16x1xi1> to vector<16x128xi1>
    %10 = vector.broadcast %cst : f32 to vector<16x128xf32>
    %11 = arith.select %9, %7, %10 : vector<16x128xi1>, vector<16x128xf32>
    %c15_i32_2 = arith.constant 15 : i32
    %12 = tpu.dynamic_rotate %1 by %c15_i32_2 dim 0 : vector<16x128xf32>, i32 -> vector<16x128xf32>
    %cst_3 = arith.constant 0.000000e+00 : f32
    %13 = vector.shape_cast %6 : vector<16x1xi1> to vector<16x1xi1>
    %14 = vector.broadcast %13 : vector<16x1xi1> to vector<16x128xi1>
    %15 = vector.broadcast %cst_3 : f32 to vector<16x128xf32>
    %16 = arith.select %14, %12, %15 : vector<16x128xi1>, vector<16x128xf32>
    %17 = tpu.concatenate %11, %1, %16 in 1 : vector<16x128xf32>, vector<16x128xf32>, vector<16x128xf32> -> vector<16x384xf32>
    %c0_4 = arith.constant 0 : index
    %c0_5 = arith.constant 0 : index
    %18 = vector.load %arg2[%c0_4, %c0_5] : memref<384x128xf32, #tpu.memory_space<vmem>>, vector<384x128xf32>
    %cst_6 = arith.constant dense<0.000000e+00> : vector<16x128xf32>
    %19 = tpu.matmul %17, %18, %cst_6 {dimension_numbers = #tpu.dot_dimension_numbers<[1], [0], [0], [1], [0, 0, 1, 1], [], []>} : vector<16x384xf32>, vector<384x128xf32>, vector<16x128xf32> -> vector<16x128xf32>
    %c0_7 = arith.constant 0 : index
    %c0_8 = arith.constant 0 : index
    %20 = vector.load %arg4[%c0_7, %c0_8] : memref<1x128xf32, #tpu.memory_space<vmem>>, vector<1x128xf32>
    %21 = vector.broadcast %20 : vector<1x128xf32> to vector<16x128xf32>
    %22 = arith.addf %19, %21 : vector<16x128xf32>
    %cst_9 = arith.constant 0.000000e+00 : f32
    %23 = vector.broadcast %cst_9 : f32 to vector<16x128xf32>
    %24 = arith.maximumf %22, %23 : vector<16x128xf32>
    %c1_i32_10 = arith.constant 1 : i32
    %25 = tpu.dynamic_rotate %24 by %c1_i32_10 dim 0 : vector<16x128xf32>, i32 -> vector<16x128xf32>
    %cst_11 = arith.constant 0.000000e+00 : f32
    %26 = vector.shape_cast %4 : vector<16x1xi1> to vector<16x1xi1>
    %27 = vector.broadcast %26 : vector<16x1xi1> to vector<16x128xi1>
    %28 = vector.broadcast %cst_11 : f32 to vector<16x128xf32>
    %29 = arith.select %27, %25, %28 : vector<16x128xi1>, vector<16x128xf32>
    %c15_i32_12 = arith.constant 15 : i32
    %30 = tpu.dynamic_rotate %24 by %c15_i32_12 dim 0 : vector<16x128xf32>, i32 -> vector<16x128xf32>
    %cst_13 = arith.constant 0.000000e+00 : f32
    %31 = vector.shape_cast %6 : vector<16x1xi1> to vector<16x1xi1>
    %32 = vector.broadcast %31 : vector<16x1xi1> to vector<16x128xi1>
    %33 = vector.broadcast %cst_13 : f32 to vector<16x128xf32>
    %34 = arith.select %32, %30, %33 : vector<16x128xi1>, vector<16x128xf32>
    %35 = tpu.concatenate %29, %24, %34 in 1 : vector<16x128xf32>, vector<16x128xf32>, vector<16x128xf32> -> vector<16x384xf32>
    %c0_14 = arith.constant 0 : index
    %c0_15 = arith.constant 0 : index
    %36 = vector.load %arg3[%c0_14, %c0_15] : memref<384x128xf32, #tpu.memory_space<vmem>>, vector<384x128xf32>
    %cst_16 = arith.constant dense<0.000000e+00> : vector<16x128xf32>
    %37 = tpu.matmul %35, %36, %cst_16 {dimension_numbers = #tpu.dot_dimension_numbers<[1], [0], [0], [1], [0, 0, 1, 1], [], []>} : vector<16x384xf32>, vector<384x128xf32>, vector<16x128xf32> -> vector<16x128xf32>
    %c0_17 = arith.constant 0 : index
    %c0_18 = arith.constant 0 : index
    %38 = vector.load %arg5[%c0_17, %c0_18] : memref<1x128xf32, #tpu.memory_space<vmem>>, vector<1x128xf32>
    %39 = vector.broadcast %38 : vector<1x128xf32> to vector<16x128xf32>
    %40 = arith.addf %37, %39 : vector<16x128xf32>
    %41 = arith.addf %40, %1 : vector<16x128xf32>
    %cst_19 = arith.constant 0.000000e+00 : f32
    %42 = vector.broadcast %cst_19 : f32 to vector<16x128xf32>
    %43 = arith.maximumf %41, %42 : vector<16x128xf32>
    %c0_20 = arith.constant 0 : index
    %c0_21 = arith.constant 0 : index
    %c0_22 = arith.constant 0 : index
    %44 = vector.load %arg6[%c0_20, %c0_21, %c0_22] : memref<1x16x128xf32, #tpu.memory_space<vmem>>, vector<1x16x128xf32>
    %45 = vector.shape_cast %44 : vector<1x16x128xf32> to vector<16x128xf32>
    %46 = vector.shape_cast %43 : vector<16x128xf32> to vector<1x16x128xf32>
    tpu.vector_store %arg6[%c0_20, %c0_21, %c0_22], %46 {strides = array<i32>} : memref<1x16x128xf32, #tpu.memory_space<vmem>>, vector<1x16x128xf32>,
    return
  }
  func.func @transform_0(%arg0: i32) -> (i32, i32, i32) {
    %c0_i32 = arith.constant 0 : i32
    %c0_i32_0 = arith.constant 0 : i32
    %c0_i32_1 = arith.constant 0 : i32
    return %arg0, %c0_i32, %c0_i32_0 : i32, i32, i32
  }
  func.func @transform_1(%arg0: i32) -> (i32, i32) {
    %c0_i32 = arith.constant 0 : i32
    %c0_i32_0 = arith.constant 0 : i32
    %c0_i32_1 = arith.constant 0 : i32
    return %c0_i32, %c0_i32_0 : i32, i32
  }
  func.func @transform_2(%arg0: i32) -> (i32, i32) {
    %c0_i32 = arith.constant 0 : i32
    %c0_i32_0 = arith.constant 0 : i32
    %c0_i32_1 = arith.constant 0 : i32
    return %c0_i32, %c0_i32_0 : i32, i32
  }
  func.func @transform_3(%arg0: i32) -> (i32, i32) {
    %c0_i32 = arith.constant 0 : i32
    %c0_i32_0 = arith.constant 0 : i32
    %c0_i32_1 = arith.constant 0 : i32
    return %c0_i32, %c0_i32_0 : i32, i32
  }
  func.func @transform_4(%arg0: i32) -> (i32, i32) {
    %c0_i32 = arith.constant 0 : i32
    %c0_i32_0 = arith.constant 0 : i32
    %c0_i32_1 = arith.constant 0 : i32
    return %c0_i32, %c0_i32_0 : i32, i32
  }
  func.func @transform_5(%arg0: i32) -> (i32, i32, i32) {
    %c0_i32 = arith.constant 0 : i32
    %c0_i32_0 = arith.constant 0 : i32
    %c0_i32_1 = arith.constant 0 : i32
    return %arg0, %c0_i32, %c0_i32_0 : i32, i32, i32
  }
}

</mosaic_0001>

<bundles_post_ra>
// kernel: tpu_custom_call.1
= control target key start
LH: loop header
LB: loop body
LE: loop exit
PB: predicated region body
PF: predicated region fallthrough
CT: control target
= control target key end

     0   :  { %10 = vsyncpa [#allocation3], 0  ;;  %s1231_s0 = inlined_call_operand.hbm [shape: f32[2,16,128], index: 0, kind: input, shape index: {}]   ;;  %s1232_s1 = inlined_call_operand.hbm [shape: f32[384,128], index: 1, kind: input, shape index: {}]   ;;  %s1233_s2 = inlined_call_operand.hbm [shape: f32[384,128], index: 2, kind: input, shape index: {}]   ;;  %s1234_s3 = inlined_call_operand.vmem [shape: f32[1,128], index: 3, kind: input, shape index: {}]   ;;  %s1235_s4 = inlined_call_operand.vmem [shape: f32[1,128], index: 4, kind: input, shape index: {}]   ;;  %s1236_s5 = inlined_call_operand.hbm [shape: f32[2,16,128], index: 5, kind: output, shape index: {}]  }
   0x1   :  { %12 = vsyncpa [#allocation3 + $0x1], 0 }
   0x2   :  { %13 = vsyncpa [#allocation6], 0 }
   0x3   :  { %14 = vsyncpa [#allocation4], 0 }
   0x4   :  { %16 = vsyncpa [#allocation4 + $0x1], 0  ;;  %s1006_s18 = smov 0   ;;  %s1008_s19 = smov 0  }
   0x5   :  { %s1010_s20 = smov 0   ;;  %s1012_s21 = smov 0  }
   0x6 LB: > { %s1027_s22 = sadd.s32 4294967295, %s968_s21   ;;  %s679_s23 = sadd.s32 4294967294, %s968_s21   ;;  %s968_s21 = sphi %s1012_s21, %s1248_s21   ;;  %s964_s20 = sphi %s1010_s20, %s1247_s20   ;;  %s960_s19 = sphi %s1008_s19, %s1246_s19   ;;  %s956_s18 = sphi %s1006_s18, %s1245_s18  }
   0x7   : > { %p42_p0 = scmp.ne.s32.totalorder %s960_s19, %s956_s18  ;;  %p43_p1 = scmp.eq.s32.totalorder %s1027_s22, 0 }
   0x8   : > { %p150_p2 = scmp.eq.s32.totalorder %s1027_s22, 1  ;;  %p156_p3 = scmp.eq.s32.totalorder %s679_s23, 1 }
   0x9   : > { %p1036_p4 = por %p43_p1, %p42_p0  ;;  %p680_p5 = scmp.ge.s32.totalorder %s968_s21, 1 }
   0xa   : > { %p1041_p6 = por %p156_p3, %p42_p0  ;;  %p163_p7 = scmp.lt.s32.totalorder %s968_s21, 3 }
   0xb   : > { %s174_s28 = sshll.u32 %s1232_s1, 4  ;;  %s970_s30 = smov [#allocation5]   ;;  %s175_s28 = int_to_ptr.hbm [resolvable:$true] %s174_s28 }
   0xc   : > { %p1049_p8 = pnand %p680_p5, %p163_p7  ;;  %s176_s6 = sshll.u32 %s970_s30, 4  ;;  %s177_s6 = int_to_ptr.vmem [resolvable:$true] %s176_s6 }
   0xd   : > { %s188_s9 = sshll.u32 %s1233_s2, 4  ;;  %s1237_s10 = smov 128   ;;  %s189_s9 = int_to_ptr.hbm [resolvable:$true] %s188_s9 }
   0xe   : > { %p747_p9 = pneg %p1049_p8  ;;  %s972_s11 = smov 8  }
   0xf   : > { %s973_s12 = smov [#allocation7]   ;;  %s1068_s14 = sadd.s32 1, %s968_s21  }
  0x10   : > { %p748_p10 = pnand %p747_p9, %p43_p1  ;;  %s190_s13 = sshll.u32 %s973_s12, 4  ;;  %s191_s13 = int_to_ptr.vmem [resolvable:$true] %s190_s13 }
  0x11   : > { %s29_s15 = sadd.s32 1, %s964_s20  ;;  %s26_s16 = ssub.s32 %s968_s21, %s1068_s14 }
  0x12   : > { %750 = dma.hbm_to_vmem [thread:$0]  (!%p748_p10), %s175_s28, 6144, %s177_s6, [#allocation6], %s1237_s10, %s1237_s10, %s972_s11  }
  0x13   : > { %753 = dma.hbm_to_vmem [thread:$0]  (!%p748_p10), %s189_s9, 6144, %s191_s13, [#allocation6], %s1237_s10, %s1237_s10, %s972_s11  }
  0x14   : > { %p36_p12 = scmp.ne.s32.totalorder %s964_s20, %s960_s19  ;;  %p27_p13 = scmp.eq.s32.totalorder %s26_s16, 0 }
  0x15   : > { %p37_p0 = scmp.eq.s32.totalorder %s968_s21, 0  ;;  %p764_p5 = scmp.lt.s32.totalorder %s968_s21, 2 }
  0x16   : > { %p1078_p3 = por %p150_p2, %p36_p12  ;;  %s210_s26 = sand.u32 1, %s964_s20  }
  0x17   : > { %s1084_s23 = scalar_select %p27_p13, %s964_s20, %s29_s15  }
  0x18   : > { %p38_p7 = por %p37_p0, %p36_p12  ;;  %s684_s27 = sshll.u32 %s210_s26, 4 }
  0x19   : > { %s701_s28 = sshll.u32 %s968_s21, 4  ;;  %s214_s8 = scalar_lea.vmem [#allocation2], %s684_s27 }
  0x1a   : > { %s219_s7 = scalar_lea.hbm %s1231_s0, %s701_s28  ;;  %s222_s9 = sshll.u32 %s214_s8, 4  ;;  %s223_s9 = int_to_ptr.vmem [resolvable:$true] %s222_s9 }
  0x1b   : > { %s220_s12 = sshll.u32 %s219_s7, 4  ;;  %p1091_p2 = pnand %p764_p5, %p38_p7  ;;  %s221_s12 = int_to_ptr.hbm [resolvable:$true] %s220_s12 }
  0x1c   : > { %s211_s15 = scalar_lea.sflag [#allocation3], %s210_s26  ;;  %s868_s16 = sshra.s32 %s221_s12, 4  ;;  %s869_s16 = int_to_ptr.hbm [resolvable:$true] %s868_s16 }
  0x1d   : > { %s870_s10 = scalar_lea.hbm %s869_s16, 16  ;;  %p872_p10 = pneg %p1091_p2 }
  0x1e   : > { %p871_p9 = scmp.ne.s32.totalorder %s869_s16, %s870_s10  ;;  %s875_s30 = scalar_lea.hbm %s1231_s0, 32 }
  0x1f   : > { %p876_p0 = scmp.lt.s32.totalorder %s869_s16, %s1231_s0  ;;  %p877_p5 = scmp.lt.s32.totalorder %s875_s30, %s870_s10 }
  0x20   : > { %p873_p12 = pnand %p872_p10, %p871_p9 }
  0x21   : > { %p878_p7 = por %p877_p5, %p876_p0 }
  0x22   : > { %p874_p13 = pneg %p873_p12 }
  0x24   : > { %p879_p11 = pnand %p878_p7, %p874_p13 }
  0x26   : > { %882 = shalt.err (!%p879_p11)
}
  0x27   : > { %s1243_s26 = smov 128   ;;  %234 = sbr.rel (%p1049_p8) target bundleno = 384 (0x180), region = 40 }
  0x28   : > { %757 = dma.hbm_to_vmem [thread:$0]  (!%p1091_p2), %s221_s12, 256, %s223_s9, %s211_s15, %s1243_s26, %s1243_s26, %s972_s11  }
  0x29   : > { %s1111_s8 = sand.u32 (!%p1049_p8), 1, %s960_s19  }
  0x2a   : > { %s688_s10 = sshll.u32 (!%p1049_p8), %s1111_s8, 4  ;;  %s237_s16 = scalar_lea.sflag (!%p1049_p8), [#allocation3], %s1111_s8 }
  0x2b   : > { %s1117_s28 = scalar_lea.vmem (!%p1049_p8), [#allocation2], %s688_s10 }
  0x2c   : > { %943 = dma.done.wait (%p1036_p4), %s237_s16, 256  }
  0x2d   : > { %945 = vsyncadd (%p1036_p4), %s237_s16, 4294967040 }
  0x2e   : > { %947 = dma.done.wait (%p43_p1), [#allocation6], 12288  }
  0x2f   : > { %949 = vsyncadd (%p43_p1), [#allocation6], 4294955008  ;;  %v356_v0 = vld [vmem:[#allocation5 + $0x178] sm:$0xff]  ;;  %v355_v2 = vld [vmem:[#allocation5 + $0x170] sm:$0xff]  ;;  %v280_v33 = vlaneseq  ;;  %s277_s12 = scalar_lea.vmem [#allocation8], %s688_s10  ;;  %s702_s13 = sshll.u32 %s1027_s22, 4 }
  0x30   : > { %v324_v1 = vld [vmem:[#allocation5 + $0x78] sm:$0xff]  ;;  %407 = vmatpush.msra.mxu2 %v356_v0  ;;  %v323_v3 = vld [vmem:[#allocation5 + $0x70] sm:$0xff]  ;;  %v354_v5 = vld [vmem:[#allocation5 + $0x168] sm:$0xff]  ;;  %s583_s30 = scalar_lea.hbm %s1236_s5, %s702_s13  ;;  %s584_s6 = sshll.u32 %s277_s12, 4  ;;  %s585_s6 = int_to_ptr.vmem [resolvable:$true] %s584_s6 }
  0x31   : > { %361 = vmatpush.msra.mxu0 %v324_v1  ;;  %v340_v4 = vld [vmem:[#allocation5 + $0xf8] sm:$0xff]  ;;  %v322_v6 = vld [vmem:[#allocation5 + $0x68] sm:$0xff]  ;;  %v339_v7 = vld [vmem:[#allocation5 + $0xf0] sm:$0xff]  ;;  %v1133_v44 = vshrl.u32 %v280_v33, 7  ;;  %s586_s7 = sshll.u32 %s583_s30, 4  ;;  %s572_s26 = scalar_lea.sflag [#allocation4], %s1111_s8  ;;  %s587_s7 = int_to_ptr.hbm [resolvable:$true] %s586_s7 }
  0x32   : > { %384 = vmatpush.msra.mxu1 %v340_v4  ;;  %408 = vmatpush.msra.mxu2 %v355_v2  ;;  %v338_v8 = vld [vmem:[#allocation5 + $0xe8] sm:$0xff]  ;;  %v353_v9 = vld [vmem:[#allocation5 + $0x160] sm:$0xff]  ;;  %v352_v12 = vld [vmem:[#allocation5 + $0x158] sm:$0xff]  ;;  %s912_s10 = sshra.s32 %s587_s7, 4  ;;  %s918_s24 = scalar_lea.hbm %s1236_s5, 32  ;;  %s913_s10 = int_to_ptr.hbm [resolvable:$true] %s912_s10 }
  0x33   : > { %362 = vmatpush.msra.mxu0 %v323_v3  ;;  %v321_v10 = vld [vmem:[#allocation5 + $0x60] sm:$0xff]  ;;  %v320_v13 = vld [vmem:[#allocation5 + $0x58] sm:$0xff]  ;;  %v351_v15 = vld [vmem:[#allocation5 + $0x150] sm:$0xff]  ;;  %vm300_vm0 = vcmp.lt.s32.totalorder %v1133_v44, 7  ;;  %vm289_vm1 = vcmp.lt.s32.totalorder %v1133_v44, 1  ;;  %vm283_vm2 = vcmp.gt.s32.totalorder %v1133_v44, 0  ;;  %p919_p11 = scmp.lt.s32.totalorder %s913_s10, %s1236_s5 }
  0x34   : > { %385 = vmatpush.msra.mxu1 %v339_v7  ;;  %409 = vmatpush.msra.mxu2 %v354_v5  ;;  %v337_v11 = vld [vmem:[#allocation5 + $0xe0] sm:$0xff]  ;;  %v336_v14 = vld [vmem:[#allocation5 + $0xd8] sm:$0xff]  ;;  %v319_v16 = vld [vmem:[#allocation5 + $0x50] sm:$0xff]  ;;  %v1149_v3 = vadd.s32 8, %v1133_v44  ;;  %s914_s22 = scalar_lea.hbm %s913_s10, 16 }
  0x35   : > { %363 = vmatpush.msra.mxu0 %v322_v6  ;;  %v335_v17 = vld [vmem:[#allocation5 + $0xd0] sm:$0xff]  ;;  %v350_v18 = vld [vmem:[#allocation5 + $0x148] sm:$0xff]  ;;  %v349_v21 = vld [vmem:[#allocation5 + $0x140] sm:$0xff]  ;;  %p915_p1 = scmp.ne.s32.totalorder %s913_s10, %s914_s22  ;;  %p920_p2 = scmp.lt.s32.totalorder %s918_s24, %s914_s22 }
  0x36   : > { %386 = vmatpush.msra.mxu1 %v338_v8  ;;  %410 = vmatpush.msra.mxu2 %v353_v9  ;;  %v318_v19 = vld [vmem:[#allocation5 + $0x48] sm:$0xff]  ;;  %v317_v22 = vld [vmem:[#allocation5 + $0x40] sm:$0xff]  ;;  %v348_v24 = vld [vmem:[#allocation5 + $0x138] sm:$0xff]  ;;  %vm286_vm3 = vcmp.lt.s32.totalorder %v1149_v3, 15 }
  0x37   : > { %364 = vmatpush.msra.mxu0 %v321_v10  ;;  %v334_v20 = vld [vmem:[#allocation5 + $0xc8] sm:$0xff]  ;;  %v333_v23 = vld [vmem:[#allocation5 + $0xc0] sm:$0xff]  ;;  %v316_v25 = vld [vmem:[#allocation5 + $0x38] sm:$0xff]  ;;  %p916_p4 = pnand %p915_p1, %p1078_p3  ;;  %p921_p9 = por %p920_p2, %p919_p11 }
  0x38   : > { %387 = vmatpush.msra.mxu1 %v337_v11  ;;  %411 = vmatpush.msra.mxu2 %v352_v12  ;;  %v332_v26 = vld [vmem:[#allocation5 + $0xb8] sm:$0xff]  ;;  %v347_v27 = vld [vmem:[#allocation5 + $0x130] sm:$0xff]  ;;  %v346_v31 = vld [vmem:[#allocation5 + $0x128] sm:$0xff] }
  0x39   : > { %365 = vmatpush.msra.mxu0 %v320_v13  ;;  %v315_v28 = vld [vmem:[#allocation5 + $0x30] sm:$0xff]  ;;  %v459_v30 = vld [vmem:[#allocation7 + $0x78] sm:$0xff]  ;;  %v314_v32 = vld [vmem:[#allocation5 + $0x28] sm:$0xff]  ;;  %p917_p8 = pneg %p916_p4 }
  0x3a   : > { %388 = vmatpush.msra.mxu1 %v336_v14  ;;  %412 = vmatpush.msra.mxu2 %v351_v15  ;;  %v331_v29 = vld [vmem:[#allocation5 + $0xb0] sm:$0xff]  ;;  %v330_v34 = vld [vmem:[#allocation5 + $0xa8] sm:$0xff]  ;;  %v345_v36 = vld [vmem:[#allocation5 + $0x120] sm:$0xff] }
  0x3b   : > { %366 = vmatpush.msra.mxu0 %v319_v16  ;;  %v458_v35 = vld [vmem:[#allocation7 + $0x70] sm:$0xff]  ;;  %v313_v37 = vld [vmem:[#allocation5 + $0x20] sm:$0xff]  ;;  %496 = vmatpush.msra.mxu3 %v459_v30  ;;  %v344_v38 = vld [vmem:[#allocation5 + $0x118] sm:$0xff]  ;;  %p922_p10 = pnand %p921_p9, %p917_p8 }
  0x3c   : > { %389 = vmatpush.msra.mxu1 %v335_v17  ;;  %413 = vmatpush.msra.mxu2 %v350_v18  ;;  %v329_v39 = vld [vmem:[#allocation5 + $0xa0] sm:$0xff]  ;;  %v457_v40 = vld [vmem:[#allocation7 + $0x68] sm:$0xff]  ;;  %v312_v41 = vld [vmem:[#allocation5 + $0x18] sm:$0xff] }
  0x3d   : > { %367 = vmatpush.msra.mxu0 %v318_v19  ;;  %v1128_v42 = vld [vmem:[%s1117_s28] sm:$0xff]  ;;  %v1131_v43 = vld [vmem:[%s1117_s28 + $0x8] sm:$0xff]  ;;  %497 = vmatpush.msra.mxu3 %v458_v35 }
  0x3e   : > { %390 = vmatpush.msra.mxu1 %v334_v20  ;;  %414 = vmatpush.msra.mxu2 %v349_v21  ;;  %v328_v45 = vld [vmem:[#allocation5 + $0x98] sm:$0xff]  ;;  %v456_v46 = vld [vmem:[#allocation7 + $0x60] sm:$0xff]  ;;  %v343_v47 = vld [vmem:[#allocation5 + $0x110] sm:$0xff]  ;;  %v298_v50 = vrot.slane %v1128_v42, 1  ;;  %v299_v51 = vrot.slane %v1131_v43, 1  ;;  %v287_v52 = vrot.slane %v1128_v42, 7 }
  0x3f   : > { %368 = vmatpush.msra.mxu0 %v317_v22  ;;  %v311_v48 = vld [vmem:[#allocation5 + $0x10] sm:$0xff]  ;;  %498 = vmatpush.msra.mxu3 %v457_v40  ;;  %v288_v53 = vrot.slane %v1131_v43, 7  ;;  %v455_v54 = vld [vmem:[#allocation7 + $0x58] sm:$0xff]  ;;  %v342_v55 = vld [vmem:[#allocation5 + $0x108] sm:$0xff] }
  0x40   : > { %391 = vmatpush.msra.mxu1 %v333_v23  ;;  %415 = vmatpush.msra.mxu2 %v348_v24  ;;  %v327_v49 = vld [vmem:[#allocation5 + $0x90] sm:$0xff]  ;;  %v310_v56 = vld [vmem:[#allocation5 + $0x8] sm:$0xff]  ;;  %v341_v59 = vld [vmem:[#allocation5 + $0x100] sm:$0xff]  ;;  %v301_v61 = vsel %vm300_vm0, %v298_v50, %v299_v51  ;;  %v302_v10 = vsel %vm300_vm0, %v299_v51, %v298_v50 }
  0x41   : > { %369 = vmatpush.msra.mxu0 %v316_v25  ;;  %v326_v57 = vld [vmem:[#allocation5 + $0x88] sm:$0xff]  ;;  %499 = vmatpush.msra.mxu3 %v456_v46  ;;  %v454_v58 = vld [vmem:[#allocation7 + $0x50] sm:$0xff]  ;;  %v309_v60 = vld [vmem:[#allocation5] sm:$0xff]  ;;  %v291_v62 = vsel %vm289_vm1, %v288_v53, %v287_v52  ;;  %v290_v11 = vsel %vm289_vm1, %v287_v52, %v288_v53 }
  0x42   : > { %392 = vmatpush.msra.mxu1 %v332_v26  ;;  %416 = vmatpush.msra.mxu2 %v347_v27  ;;  %v325_v63 = vld [vmem:[#allocation5 + $0x80] sm:$0xff]  ;;  %v475_v0 = vld [vmem:[#allocation7 + $0xf8] sm:$0xff]  ;;  %v453_v1 = vld [vmem:[#allocation7 + $0x48] sm:$0xff] }
  0x43   : > { %370 = vmatpush.msra.mxu0 %v315_v28  ;;  %500 = vmatpush.msra.mxu3 %v455_v54  ;;  %v474_v2 = vld [vmem:[#allocation7 + $0xf0] sm:$0xff]  ;;  %v452_v4 = vld [vmem:[#allocation7 + $0x40] sm:$0xff]  ;;  %v1151_v5 = vld [vmem:[#allocation7 + $0x178] sm:$0xff] }
  0x44   : > { %393 = vmatpush.msra.mxu1 %v331_v29  ;;  %417 = vmatpush.msra.mxu2 %v346_v31  ;;  %v473_v6 = vld [vmem:[#allocation7 + $0xe8] sm:$0xff]  ;;  %v451_v7 = vld [vmem:[#allocation7 + $0x38] sm:$0xff]  ;;  %v1154_v8 = vld [vmem:[#allocation7 + $0x170] sm:$0xff] }
  0x45   : > { %371 = vmatpush.msra.mxu0 %v314_v32  ;;  %501 = vmatpush.msra.mxu3 %v454_v58  ;;  %v472_v9 = vld [vmem:[#allocation7 + $0xe0] sm:$0xff]  ;;  %v471_v12 = vld [vmem:[#allocation7 + $0xd8] sm:$0xff]  ;;  %v450_v13 = vld [vmem:[#allocation7 + $0x30] sm:$0xff] }
  0x46   : > { %394 = vmatpush.msra.mxu1 %v330_v34  ;;  %418 = vmatpush.msra.mxu2 %v345_v36  ;;  %v470_v14 = vld [vmem:[#allocation7 + $0xd0] sm:$0xff]  ;;  %v1165_v15 = vld [vmem:[#allocation7 + $0x168] sm:$0xff]  ;;  %v1168_v18 = vld [vmem:[#allocation7 + $0x160] sm:$0xff] }
  0x47   : > { %372 = vmatpush.msra.mxu0 %v313_v37  ;;  %502 = vmatpush.msra.mxu3 %v453_v1  ;;  %v449_v16 = vld [vmem:[#allocation7 + $0x28] sm:$0xff]  ;;  %v448_v19 = vld [vmem:[#allocation7 + $0x20] sm:$0xff]  ;;  %v487_v21 = vld [vmem:[#allocation7 + $0x158] sm:$0xff] }
  0x48   : > { %395 = vmatpush.msra.mxu1 %v329_v39  ;;  %419 = vmatpush.msra.mxu2 %v344_v38  ;;  %v469_v17 = vld [vmem:[#allocation7 + $0xc8] sm:$0xff]  ;;  %v468_v20 = vld [vmem:[#allocation7 + $0xc0] sm:$0xff]  ;;  %v447_v22 = vld [vmem:[#allocation7 + $0x18] sm:$0xff] }
  0x49   : > { %373 = vmatpush.msra.mxu0 %v312_v41  ;;  %503 = vmatpush.msra.mxu3 %v452_v4  ;;  %v467_v23 = vld [vmem:[#allocation7 + $0xb8] sm:$0xff]  ;;  %v486_v24 = vld [vmem:[#allocation7 + $0x150] sm:$0xff]  ;;  %v465_v26 = vld [vmem:[#allocation7 + $0xa8] sm:$0xff] }
  0x4a   : > { %396 = vmatpush.msra.mxu1 %v328_v45  ;;  %420 = vmatpush.msra.mxu2 %v343_v47  ;;  %v466_v25 = vld [vmem:[#allocation7 + $0xb0] sm:$0xff]  ;;  %v464_v28 = vld [vmem:[#allocation7 + $0xa0] sm:$0xff]  ;;  %v485_v29 = vld [vmem:[#allocation7 + $0x148] sm:$0xff] }
  0x4b   : > { %374 = vmatpush.msra.mxu0 %v311_v48  ;;  %504 = vmatpush.msra.mxu3 %v451_v7  ;;  %v446_v27 = vld [vmem:[#allocation7 + $0x10] sm:$0xff]  ;;  %v445_v30 = vld [vmem:[#allocation7 + $0x8] sm:$0xff]  ;;  %v463_v31 = vld [vmem:[#allocation7 + $0x98] sm:$0xff] }
  0x4c   : > { %397 = vmatpush.msra.mxu1 %v327_v49  ;;  %421 = vmatpush.msra.mxu2 %v342_v55  ;;  %v484_v32 = vld [vmem:[#allocation7 + $0x140] sm:$0xff]  ;;  %v462_v34 = vld [vmem:[#allocation7 + $0x90] sm:$0xff]  ;;  %v483_v35 = vld [vmem:[#allocation7 + $0x138] sm:$0xff] }
  0x4d   : > { %375 = vmatpush.msra.mxu0 %v310_v56  ;;  %505 = vmatpush.msra.mxu3 %v450_v13  ;;  %v444_v33 = vld [vmem:[#allocation7] sm:$0xff]  ;;  %v461_v36 = vld [vmem:[#allocation7 + $0x88] sm:$0xff]  ;;  %v482_v37 = vld [vmem:[#allocation7 + $0x130] sm:$0xff] }
  0x4e   : > { %398 = vmatpush.msra.mxu1 %v326_v57  ;;  %422 = vmatpush.msra.mxu2 %v341_v59  ;;  %v460_v38 = vld [vmem:[#allocation7 + $0x80] sm:$0xff]  ;;  %v481_v39 = vld [vmem:[#allocation7 + $0x128] sm:$0xff]  ;;  %v479_v41 = vld [vmem:[#allocation7 + $0x118] sm:$0xff] }
  0x4f   : > { %376 = vmatpush.msra.mxu0 %v309_v60  ;;  %423 = vmatmul.f32.vlgmr.msra.gmra.mxu2 %v301_v61  ;;  %v480_v40 = vld [vmem:[#allocation7 + $0x120] sm:$0xff]  ;;  %v478_v45 = vld [vmem:[#allocation7 + $0x110] sm:$0xff]  ;;  %v477_v46 = vld [vmem:[#allocation7 + $0x108] sm:$0xff] }
  0x50   : > { %692 = vmatmul.msk.f32.vlgmr.msra.gmra.mxu0 %vm283_vm2, %v291_v62  ;;  %399 = vmatpush.msra.mxu1 %v325_v63  ;;  %v476_v47 = vld [vmem:[#allocation7 + $0x100] sm:$0xff] }
  0x51   : > { %519 = vmatpush.msrb.mxu0 %v475_v0  ;;  %400 = vmatmul.f32.vlgmr.msra.gmra.mxu1 %v1128_v42  ;;  %v806_v48 = vld [vmem:[%s1234_s3] ss:$0 sm:$0xff] }
  0x52   : > { %703 = vmatpush.msrb.mxu2 %v475_v0  ;;  %542 = vmatpush.msrb.mxu1 %v1151_v5 }
  0x53   : > { %520 = vmatpush.msrb.mxu0 %v474_v2  ;;  %506 = vmatpush.msra.mxu3 %v449_v16 }
  0x54   : > { %704 = vmatpush.msrb.mxu2 %v474_v2  ;;  %543 = vmatpush.msrb.mxu1 %v1154_v8 }
  0x55   : > { %521 = vmatpush.msrb.mxu0 %v473_v6  ;;  %507 = vmatpush.msra.mxu3 %v448_v19 }
  0x56   : > { %705 = vmatpush.msrb.mxu2 %v473_v6  ;;  %544 = vmatpush.msrb.mxu1 %v1165_v15 }
  0x57   : > { %522 = vmatpush.msrb.mxu0 %v472_v9  ;;  %693 = vmatmul.msk.f32.gmra.mxu2 %vm286_vm3, %v302_v10 }
  0x58   : > { %380 = vmatmul.f32.gmra.mxu0 %v290_v11  ;;  %706 = vmatpush.msrb.mxu2 %v472_v9 }
  0x59   : > { %523 = vmatpush.msrb.mxu0 %v471_v12  ;;  %403 = vmatmul.f32.gmra.mxu1 %v1131_v43 }
  0x5a   : > { %707 = vmatpush.msrb.mxu2 %v471_v12  ;;  %545 = vmatpush.msrb.mxu1 %v1168_v18 }
  0x5b   : > { %524 = vmatpush.msrb.mxu0 %v470_v14  ;;  %508 = vmatpush.msra.mxu3 %v447_v22 }
  0x5c   : > { %708 = vmatpush.msrb.mxu2 %v470_v14  ;;  %546 = vmatpush.msrb.mxu1 %v487_v21 }
  0x5d   : > { %525 = vmatpush.msrb.mxu0 %v469_v17  ;;  %509 = vmatpush.msra.mxu3 %v446_v27 }
  0x5e   : > { %709 = vmatpush.msrb.mxu2 %v469_v17  ;;  %547 = vmatpush.msrb.mxu1 %v486_v24 }
  0x5f   : > { %526 = vmatpush.msrb.mxu0 %v468_v20  ;;  %510 = vmatpush.msra.mxu3 %v445_v30 }
  0x60   : > { %710 = vmatpush.msrb.mxu2 %v468_v20  ;;  %548 = vmatpush.msrb.mxu1 %v485_v29 }
  0x61   : > { %527 = vmatpush.msrb.mxu0 %v467_v23  ;;  %511 = vmatpush.msra.mxu3 %v444_v33 }
  0x62   : > { %711 = vmatpush.msrb.mxu2 %v467_v23  ;;  %549 = vmatpush.msrb.mxu1 %v484_v32 }
  0x63   : > { %528 = vmatpush.msrb.mxu0 %v466_v25  ;;  %719 = vmatpush.msrb.mxu3 %v1151_v5 }
  0x64   : > { %712 = vmatpush.msrb.mxu2 %v466_v25  ;;  %550 = vmatpush.msrb.mxu1 %v483_v35 }
  0x65   : > { %529 = vmatpush.msrb.mxu0 %v465_v26  ;;  %720 = vmatpush.msrb.mxu3 %v1154_v8  ;;  %v807_v8 = vld [vmem:[%s1235_s4] ss:$0 sm:$0xff] }
  0x66   : > { %713 = vmatpush.msrb.mxu2 %v465_v26  ;;  %551 = vmatpush.msrb.mxu1 %v482_v37 }
  0x67   : > { %530 = vmatpush.msrb.mxu0 %v464_v28  ;;  %721 = vmatpush.msrb.mxu3 %v1165_v15 }
  0x68   : > { %714 = vmatpush.msrb.mxu2 %v464_v28  ;;  %552 = vmatpush.msrb.mxu1 %v481_v39 }
  0x69   : > { %531 = vmatpush.msrb.mxu0 %v463_v31  ;;  %722 = vmatpush.msrb.mxu3 %v1168_v18 }
  0x6a   : > { %715 = vmatpush.msrb.mxu2 %v463_v31  ;;  %553 = vmatpush.msrb.mxu1 %v480_v40 }
  0x6b   : > { %532 = vmatpush.msrb.mxu0 %v462_v34  ;;  %723 = vmatpush.msrb.mxu3 %v487_v21 }
  0x6c   : > { %716 = vmatpush.msrb.mxu2 %v462_v34  ;;  %554 = vmatpush.msrb.mxu1 %v479_v41 }
  0x6d   : > { %533 = vmatpush.msrb.mxu0 %v461_v36  ;;  %724 = vmatpush.msrb.mxu3 %v486_v24 }
  0x6e   : > { %717 = vmatpush.msrb.mxu2 %v461_v36  ;;  %555 = vmatpush.msrb.mxu1 %v478_v45 }
  0x6f   : > { %534 = vmatpush.msrb.mxu0 %v460_v38  ;;  %725 = vmatpush.msrb.mxu3 %v485_v29 }
  0x70   : > { %718 = vmatpush.msrb.mxu2 %v460_v38  ;;  %556 = vmatpush.msrb.mxu1 %v477_v46 }
  0x71   : > { %726 = vmatpush.msrb.mxu3 %v484_v32 }
  0x72   : > { %557 = vmatpush.msrb.mxu1 %v476_v47 }
  0x73   : > { %727 = vmatpush.msrb.mxu3 %v483_v35 }
  0x75   : > { %728 = vmatpush.msrb.mxu3 %v482_v37 }
  0x77   : > { %729 = vmatpush.msrb.mxu3 %v481_v39 }
  0x79   : > { %730 = vmatpush.msrb.mxu3 %v480_v40 }
  0x7b   : > { %731 = vmatpush.msrb.mxu3 %v479_v41 }
  0x7d   : > { %732 = vmatpush.msrb.mxu3 %v478_v45 }
  0x7f   : > { %733 = vmatpush.msrb.mxu3 %v477_v46 }
  0x81   : > { %734 = vmatpush.msrb.mxu3 %v476_v47 }
  0xcd   : > { %v378_v49 = vpop.f32.mrf.mxu0 }
  0xce   : > { %v379_v50 = vadd.f32 %v806_v48, %v378_v49  ;;  %v401_v51 = vpop.f32.mrf.mxu1 }
  0xd0   : > { %v402_v52 = vadd.f32 %v401_v51, %v379_v50 }
  0xd2   : > { %v424_v53 = vpop.f32.mrf.mxu2 }
  0xd3   : > { %v425_v54 = vadd.f32 %v424_v53, %v402_v52 }
  0xd5   : > { %v381_v55 = vpop.f32.mrf.mxu0  ;;  %v430_v56 = vmax.f32 %v425_v54, 0.0 }
  0xd6   : > { %v382_v57 = vadd.f32 %v806_v48, %v381_v55  ;;  %v404_v58 = vpop.f32.mrf.mxu1 }
  0xd7   : > { %535 = vmatmul.f32.vlgmr.msrb.gmra.mxu0 %v430_v56  ;;  %v432_v63 = vrot.slane %v430_v56, 7  ;;  %v438_v0 = vrot.slane %v430_v56, 1 }
  0xd8   : > { %v405_v59 = vadd.f32 %v404_v58, %v382_v57 }
  0xda   : > { %v427_v60 = vpop.f32.mrf.mxu2 }
  0xdb   : > { %v428_v61 = vadd.f32 %v427_v60, %v405_v59 }
  0xdd   : > { %v431_v62 = vmax.f32 %v428_v61, 0.0 }
  0xdf   : > { %v433_v1 = vrot.slane %v431_v62, 7  ;;  %v439_v2 = vrot.slane %v431_v62, 1  ;;  %538 = vmatmul.f32.vlgmr.msrb.gmra.mxu2 %v431_v62 }
  0xe1   : > { %v435_v4 = vsel %vm289_vm1, %v433_v1, %v432_v63  ;;  %v440_v5 = vsel %vm300_vm0, %v438_v0, %v439_v2  ;;  %v434_v6 = vsel %vm289_vm1, %v432_v63, %v433_v1  ;;  %v441_v7 = vsel %vm300_vm0, %v439_v2, %v438_v0 }
  0xe2   : > { %694 = vmatmul.msk.f32.vlgmr.msra.gmra.mxu3 %vm283_vm2, %v435_v4  ;;  %558 = vmatmul.f32.vlgmr.msrb.gmra.mxu1 %v440_v5 }
  0xea   : > { %515 = vmatmul.f32.gmra.mxu3 %v434_v6 }
  0xf2   : > { %695 = vmatmul.msk.f32.vlgmr.msrb.gmra.mxu3 %vm286_vm3, %v441_v7 }
 0x154   : > { %v536_v11 = vpop.f32.mrf.mxu0 }
 0x15f   : > { %v559_v13 = vpop.f32.mrf.mxu1 }
 0x162   : > { %v539_v3 = vpop.f32.mrf.mxu2 }
 0x165   : > { %v513_v9 = vpop.f32.mrf.mxu3 }
 0x166   : > { %v514_v10 = vadd.f32 %v807_v8, %v513_v9 }
 0x168   : > { %v537_v12 = vadd.f32 %v536_v11, %v514_v10 }
 0x16a   : > { %v560_v14 = vadd.f32 %v559_v13, %v537_v12 }
 0x16c   : > { %v565_v15 = vadd.f32 %v560_v14, %v1128_v42 }
 0x16d   : > { %v516_v16 = vpop.f32.mrf.mxu3 }
 0x16e   : > { %v567_v17 = vmax.f32 %v565_v15, 0.0  ;;  %v517_v44 = vadd.f32 %v807_v8, %v516_v16 }
 0x170   : > { %569 = vst [vmem:[%s277_s12] sm:$0xff] %v567_v17  ;;  %v540_v18 = vadd.f32 %v539_v3, %v517_v44 }
 0x175   : > { %v562_v19 = vpop.f32.mrf.mxu3 }
 0x176   : > { %v563_v20 = vadd.f32 %v562_v19, %v540_v18 }
 0x178   : > { %v566_v42 = vadd.f32 %v563_v20, %v1131_v43 }
 0x17a   : > { %v568_v21 = vmax.f32 %v566_v42, 0.0 }
 0x17c   : > { %570 = vst [vmem:[%s277_s12 + $0x8] sm:$0xff] %v568_v21 }
 0x17d   : > { %925 = shalt.err (!%p922_p10)
}
 0x17e   : > { %s974_s8 = smov 128   ;;  %s975_s9 = smov 8  }
 0x17f   : > { %745 = dma.vmem_to_hbm [thread:$0]  (%p1078_p3), %s585_s6, 256, %s587_s7, %s572_s26, %s974_s8, %s974_s8, %s975_s9  }
 0x180 PF: > { %s601_s12 = sand.u32 1, %s956_s18   ;;  %p1244_p12 = scmp.ge.s32.totalorder %s968_s21, 2 }
 0x181   : > { %s602_s13 = scalar_lea.sflag [#allocation4], %s601_s12 }
 0x182   : > { %p759_p13 = pnand %p1244_p12, %p1041_p6 }
 0x184   : > { %p760_p0 = pneg %p759_p13 }
 0x186   : > { %951 = dma.done.wait (%p760_p0), %s602_s13, 256  }
 0x187   : > { %953 = vsyncadd (%p760_p0), %s602_s13, 4294967040  ;;  %p19_p5 = scmp.ge.s32.totalorder %s1068_s14, 4   ;;  %s1245_s18 = smov %s960_s19 }
 0x188   : > { %s1246_s19 = smov %s964_s20  ;;  %s1247_s20 = smov %s1084_s23 }
 0x189   : > { %s1248_s21 = smov %s1068_s14  ;;  %21 = sbr.rel (!%p19_p5) target bundleno = 6 (0x6), region = 93 }
 0x18e   :  { %608 = vsyncpa [#allocation3], 1 }
 0x18f   :  { %610 = vsyncpa [#allocation3 + $0x1], 1 }
 0x190   :  { %611 = vsyncpa [#allocation6], 1 }
 0x191   :  { %612 = vsyncpa [#allocation4], 1 }
 0x192   :  { %614 = vsyncpa [#allocation4 + $0x1], 1 }

</bundles_post_ra>
